<compile_context>
chip_gen: v5e
topology: v5e:2x2
jax: 0.10.0
libtpu: 0.0.40
codegen_flags: <defaults>
</compile_context>

<pallas_src>
import numpy as np

import jax
import jax.numpy as jnp
from jax.experimental import pallas as pl
from jax.experimental.pallas import tpu as pltpu


def _bbdm_sampler_kernel(coef_ref,      # SMEM (S*5,): [m_t, a_x, a_v, a_y, a_n] per step, flattened
                         xin_ref,       # VMEM (C, Lt): initial x_noisy tile (batch folded in lanes)
                         cond_ref,      # VMEM (C, Lt): target_condition tile
                         noise_ref,     # VMEM (S, C, Lt): pre-drawn noise for every step (resident)
                         w_ref,         # VMEM (C, C): surrogate net weight (1x1 conv)
                         b_ref,         # VMEM (C, 1): surrogate net bias
                         out_ref):      # VMEM (C, Lt): final sample (written once)
    S = noise_ref.shape[0]
    C, Lt = out_ref.shape

    cond = cond_ref[...]                                    # (C, Lt), loaded once
    w = w_ref[...]                                          # (C, C)
    # Hoist the (C,1)->(C,Lt) bias lane-broadcast out of the step loop
    # (JAX does not CSE broadcast_in_dim; per step we only scale by m_t).
    b_full = jnp.broadcast_to(b_ref[...], (C, Lt))

    def step(s, x):
        base = s * 5
        m_t = coef_ref[base + 0]
        a_x = coef_ref[base + 1]
        a_v = coef_ref[base + 2]
        a_y = coef_ref[base + 3]
        a_n = coef_ref[base + 4]

        # Surrogate net: v_pred = net(x_noisy, m_t) = W @ x + m_t * bias.
        # Tiny 8x8 contraction -> MXU (HIGHEST keeps full f32 fidelity).
        # TODO(synk): the real `net` is an arbitrary user nn.Module; a pointwise
        # conv conditioned on m_t stands in for it here.
        v = jnp.dot(w, x, precision=jax.lax.Precision.HIGHEST,
                    preferred_element_type=jnp.float32) + m_t * b_full

        # Fused posterior update (coefficients precomputed host-side):
        #   x0_recon      = x - v
        #   x_tminus_mean = (1-m_nt)*x0 + m_nt*cond + c*(x - (1-m_t)*x0 - m_t*cond)
        #   x_new         = x_tminus_mean + sigma_t*noise
        # collapses to a_x*x + a_v*v + a_y*cond + a_n*noise (terminal step:
        # a_x=1, a_v=-1, a_y=a_n=0, so the unused noise slab read is harmless).
        return a_x * x + a_v * v + a_y * cond + a_n * noise_ref[s]

    out_ref[...] = jax.lax.fori_loop(0, S, step, xin_ref[...])


def _bbdm_step_scalars(i, indices, mean_t, variance_t):
    """f32 schedule scalars for sampling step i (m_nt/sigma_t/c are None for t==0)."""
    idx = int(indices[i])
    m_t = np.float32(mean_t[idx])
    if idx == 0:
        return m_t, None, None, None
    # The module's schedule only has idx==0 at the terminal position; guard anyway.
    assert i + 1 < indices.shape[0], "non-terminal step must have a successor index"
    nidx = int(indices[i + 1])
    m_nt = np.float32(mean_t[nidx])
    var_t = np.float32(variance_t[idx])
    var_nt = np.float32(variance_t[nidx])
    one = np.float32(1.0)
    zero = np.float32(0.0)
    sigma2_t = (var_t - var_nt * (one - m_t) ** 2 / (one - m_nt) ** 2) * var_nt / var_t
    sigma2_t = np.float32(max(zero, sigma2_t))              # clamp fp-rounding negatives
    sigma_t = np.sqrt(sigma2_t).astype(np.float32)
    c = np.sqrt(np.float32(max(zero, (var_nt - sigma2_t) / var_t))).astype(np.float32)
    return m_t, m_nt, sigma_t, c


def _bbdm_step_coefficients(indices, mean_t, variance_t):
    """Flat per-step [m_t, a_x, a_v, a_y, a_n] table (f32, (S*5,), SMEM-friendly 1D)."""
    S = indices.shape[0]
    coefs = np.zeros((S, 5), dtype=np.float32)
    one = np.float32(1.0)
    for i in range(S):
        m_t, m_nt, sigma_t, c = _bbdm_step_scalars(i, indices, mean_t, variance_t)
        if m_nt is None:                                     # terminal (t == 0) step
            coefs[i] = [m_t, 1.0, -1.0, 0.0, 0.0]
        else:
            a_x = (one - m_nt) + c * m_t
            a_v = c * (one - m_t) - (one - m_nt)
            a_y = m_nt - c * m_t
            a_n = sigma_t
            coefs[i] = [m_t, a_x, a_v, a_y, a_n]
    return coefs.reshape(-1)


def bbdm_sample(x_noisy, target_condition, noise_folded, indices, mean_t, variance_t,
                w, bias, *, lane_tile=None):
    """Pallas implementation of BBDMSampler.forward with a pointwise-conv surrogate net.

    noise_folded is expected already in the kernel's (S, C, B*T) layout (no
    wrapper-side transpose of the largest tensor).
    """
    B, C, T = x_noisy.shape
    S = int(indices.shape[0])
    L = B * T
    assert target_condition.shape == (B, C, T)
    assert noise_folded.shape == (S, C, L)
    assert w.shape == (C, C) and bias.shape == (C,)

    if lane_tile is None:
        lane_tile = L
    assert L % lane_tile == 0 and (lane_tile == L or lane_tile % 128 == 0), \
        "lane_tile must divide B*T and be a multiple of 128 (or the full extent)"
    n_tiles = L // lane_tile

    coefs = _bbdm_step_coefficients(indices, mean_t, variance_t)            # (S*5,) f32

    # Fold batch into the lane axis (layout plumbing; cheap, done once).
    x0_f = jnp.transpose(x_noisy, (1, 0, 2)).reshape(C, L)
    cond_f = jnp.transpose(target_condition, (1, 0, 2)).reshape(C, L)
    b_col = bias.reshape(C, 1)

    grid_spec = pltpu.PrefetchScalarGridSpec(
        num_scalar_prefetch=1,                                              # coefs -> SMEM
        grid=(n_tiles,),                                                    # lane tiles (parallel)
        in_specs=[
            pl.BlockSpec((C, lane_tile), lambda i, c: (0, i)),              # initial x_noisy
            pl.BlockSpec((C, lane_tile), lambda i, c: (0, i)),              # target_condition
            pl.BlockSpec((S, C, lane_tile), lambda i, c: (0, 0, i)),        # full noise slab (resident)
            pl.BlockSpec((C, C), lambda i, c: (0, 0)),                      # net weight
            pl.BlockSpec((C, 1), lambda i, c: (0, 0)),                      # net bias
        ],
        out_specs=pl.BlockSpec((C, lane_tile), lambda i, c: (0, i)),        # final sample
    )

    out_folded = pl.pallas_call(
        _bbdm_sampler_kernel,
        out_shape=jax.ShapeDtypeStruct((C, L), jnp.float32),
        grid_spec=grid_spec,
        # Lane tiles are independent -> "parallel" (uses both TCs on v7x).
        # For production L, also set vmem_limit_bytes here and shrink lane_tile
        # on v7x (64 MiB VMEM) so x0/cond/out/noise tiles fit with headroom.
        compiler_params=pltpu.CompilerParams(
            dimension_semantics=("parallel",)),
    )(coefs, x0_f, cond_f, noise_folded, w, b_col)

    return jnp.transpose(out_folded.reshape(C, B, T), (1, 0, 2))


def _reference_bbdm_sample(x_noisy, target_condition, noise_folded, indices, mean_t,
                           variance_t, w, bias):
    """Pure-JAX mirror of BBDMSampler.forward (same surrogate net, same pre-drawn noise)."""
    B, C, T = x_noisy.shape
    x = x_noisy
    S = indices.shape[0]
    one = np.float32(1.0)
    for i in range(S):
        m_t, m_nt, sigma_t, c = _bbdm_step_scalars(i, indices, mean_t, variance_t)
        v_pred = (jnp.einsum('oc,bct->bot', w, x, precision=jax.lax.Precision.HIGHEST)
                  + m_t * bias[None, :, None])
        x0_recon = x - v_pred
        if m_nt is None:
            x = x0_recon
        else:
            noise = jnp.transpose(noise_folded[i].reshape(C, B, T), (1, 0, 2))
            x_tminus_mean = ((one - m_nt) * x0_recon + m_nt * target_condition
                             + c * (x - (one - m_t) * x0_recon - m_t * target_condition))
            x = x_tminus_mean + sigma_t * noise
    return x


if __name__ == "__main__":
    # Small demo shapes (B, C, T audio latents); sample_steps kept small for the
    # demo (module default is 200), schedule identical to the PyTorch module.
    B, C, T = 2, 8, 256
    training_num_steps = 1000
    sample_steps = 10
    m_min, m_max = 0.001, 0.999

    mean_t = np.linspace(m_min, m_max, training_num_steps, dtype=np.float32)
    variance_t = (2.0 * (mean_t - mean_t ** 2)).astype(np.float32)
    midsteps = np.arange(training_num_steps - 1, 1,
                         -((training_num_steps - 1) / (sample_steps - 2))).astype(np.int64)
    indices = np.concatenate([midsteps, np.array([1, 0], dtype=np.int64)])
    assert indices.shape[0] == sample_steps

    key = jax.random.PRNGKey(0)
    k_x, k_c, k_n, k_w, k_b = jax.random.split(key, 5)

    x_noisy = jax.random.normal(k_x, (B, C, T), dtype=jnp.float32)
    target_condition = jax.random.normal(k_c, (B, C, T), dtype=jnp.float32)
    # Noise drawn directly in the kernel's folded (S, C, B*T) layout.
    # TODO(synk): the PyTorch loop draws torch.randn_like(x_noisy) inside every
    # step; in-kernel pltpu.prng_* could remove this input entirely, but
    # pre-drawn noise keeps the pure-JAX reference check exact.
    noise_folded = jax.random.normal(k_n, (sample_steps, C, B * T), dtype=jnp.float32)

    # Deterministic surrogate-net parameters (1x1 conv C->C plus m_t-scaled bias).
    w = 0.1 * jax.random.normal(k_w, (C, C), dtype=jnp.float32)
    bias = 0.1 * jax.random.normal(k_b, (C,), dtype=jnp.float32)

    out = bbdm_sample(x_noisy, target_condition, noise_folded, indices, mean_t,
                      variance_t, w, bias, lane_tile=256)
    out = jax.block_until_ready(out)

    ref = jax.block_until_ready(
        _reference_bbdm_sample(x_noisy, target_condition, noise_folded, indices,
                               mean_t, variance_t, w, bias))
    np.testing.assert_allclose(np.asarray(out), np.asarray(ref), rtol=5e-4, atol=5e-5)

    print("KERNEL_OK")
</pallas_src>

<mosaic_0001>
module attributes {stable_mosaic.version = 11 : i64} {
  func.func @_bbdm_sampler_kernel(%arg0: i32, %arg1: memref<50xf32, #tpu.memory_space<smem>>, %arg2: memref<8x256xf32, #tpu.memory_space<vmem>>, %arg3: memref<8x256xf32, #tpu.memory_space<vmem>>, %arg4: memref<10x8x256xf32, #tpu.memory_space<vmem>>, %arg5: memref<8x8xf32, #tpu.memory_space<vmem>>, %arg6: memref<8x1xf32, #tpu.memory_space<vmem>>, %arg7: memref<8x256xf32, #tpu.memory_space<vmem>>) attributes {dimension_semantics = [#tpu.dimension_semantics<parallel>], iteration_bounds = array<i64: 2>, scalar_prefetch = 1 : i64, scratch_operands = 0 : i64, tpu.core_type = #tpu.core_type<tc>, window_params = [{transform_indices = @transform_0, window_bounds = array<i64: 8, 256>}, {transform_indices = @transform_1, window_bounds = array<i64: 8, 256>}, {transform_indices = @transform_2, window_bounds = array<i64: 10, 8, 256>}, {pipeline_mode = #tpu.pipeline_mode<synchronous>, transform_indices = @transform_3, window_bounds = array<i64: 8, 8>}, {pipeline_mode = #tpu.pipeline_mode<synchronous>, transform_indices = @transform_4, window_bounds = array<i64: 8, 1>}, {transform_indices = @transform_5, window_bounds = array<i64: 8, 256>}]} {
    %c0 = arith.constant 0 : index
    %c0_0 = arith.constant 0 : index
    %0 = vector.load %arg3[%c0, %c0_0] : memref<8x256xf32, #tpu.memory_space<vmem>>, vector<8x256xf32>
    %c0_1 = arith.constant 0 : index
    %c0_2 = arith.constant 0 : index
    %1 = vector.load %arg5[%c0_1, %c0_2] : memref<8x8xf32, #tpu.memory_space<vmem>>, vector<8x8xf32>
    %c0_3 = arith.constant 0 : index
    %c0_4 = arith.constant 0 : index
    %2 = vector.load %arg6[%c0_3, %c0_4] : memref<8x1xf32, #tpu.memory_space<vmem>>, vector<8x1xf32>
    %3 = vector.shape_cast %2 : vector<8x1xf32> to vector<8x1xf32>
    %4 = vector.broadcast %3 : vector<8x1xf32> to vector<8x256xf32>
    %c0_5 = arith.constant 0 : index
    %c0_6 = arith.constant 0 : index
    %5 = vector.load %arg2[%c0_5, %c0_6] : memref<8x256xf32, #tpu.memory_space<vmem>>, vector<8x256xf32>
    %c0_i32 = arith.constant 0 : i32
    %c10_i32 = arith.constant 10 : i32
    %6 = arith.addi %c0_i32, %c10_i32 : i32
    %c1_i32 = arith.constant 1 : i32
    %7 = scf.for %arg8 = %c0_i32 to %6 step %c1_i32 iter_args(%arg9 = %5) -> (vector<8x256xf32>)  : i32 {
      %c5_i32 = arith.constant 5 : i32
      %9 = arith.muli %arg8, %c5_i32 : i32
      %c0_i32_10 = arith.constant 0 : i32
      %10 = arith.addi %9, %c0_i32_10 : i32
      %11 = arith.index_cast %10 : i32 to index
      %12 = memref.load %arg1[%11] : memref<50xf32, #tpu.memory_space<smem>>
      %c1_i32_11 = arith.constant 1 : i32
      %13 = arith.addi %9, %c1_i32_11 : i32
      %14 = arith.index_cast %13 : i32 to index
      %15 = memref.load %arg1[%14] : memref<50xf32, #tpu.memory_space<smem>>
      %c2_i32 = arith.constant 2 : i32
      %16 = arith.addi %9, %c2_i32 : i32
      %17 = arith.index_cast %16 : i32 to index
      %18 = memref.load %arg1[%17] : memref<50xf32, #tpu.memory_space<smem>>
      %c3_i32 = arith.constant 3 : i32
      %19 = arith.addi %9, %c3_i32 : i32
      %20 = arith.index_cast %19 : i32 to index
      %21 = memref.load %arg1[%20] : memref<50xf32, #tpu.memory_space<smem>>
      %c4_i32 = arith.constant 4 : i32
      %22 = arith.addi %9, %c4_i32 : i32
      %23 = arith.index_cast %22 : i32 to index
      %24 = memref.load %arg1[%23] : memref<50xf32, #tpu.memory_space<smem>>
      %cst = arith.constant dense<0.000000e+00> : vector<8x256xf32>
      %25 = tpu.matmul %1, %arg9, %cst {dimension_numbers = #tpu.dot_dimension_numbers<[1], [0], [0], [1], [0, 0, 1, 1], [], []>, precision = #tpu.contract_precision<fp32>} : vector<8x8xf32>, vector<8x256xf32>, vector<8x256xf32> -> vector<8x256xf32>
      %26 = vector.broadcast %12 : f32 to vector<8x256xf32>
      %27 = arith.mulf %26, %4 : vector<8x256xf32>
      %28 = arith.addf %25, %27 : vector<8x256xf32>
      %29 = vector.broadcast %15 : f32 to vector<8x256xf32>
      %30 = arith.mulf %29, %arg9 : vector<8x256xf32>
      %31 = vector.broadcast %18 : f32 to vector<8x256xf32>
      %32 = arith.mulf %31, %28 : vector<8x256xf32>
      %33 = arith.addf %30, %32 : vector<8x256xf32>
      %34 = vector.broadcast %21 : f32 to vector<8x256xf32>
      %35 = arith.mulf %34, %0 : vector<8x256xf32>
      %36 = arith.addf %33, %35 : vector<8x256xf32>
      %37 = arith.index_cast %arg8 : i32 to index
      %c0_12 = arith.constant 0 : index
      %c0_13 = arith.constant 0 : index
      %38 = vector.load %arg4[%37, %c0_12, %c0_13] : memref<10x8x256xf32, #tpu.memory_space<vmem>>, vector<1x8x256xf32>
      %39 = vector.shape_cast %38 : vector<1x8x256xf32> to vector<8x256xf32>
      %40 = vector.broadcast %24 : f32 to vector<8x256xf32>
      %41 = arith.mulf %40, %39 : vector<8x256xf32>
      %42 = arith.addf %36, %41 : vector<8x256xf32>
      scf.yield %42 : vector<8x256xf32>
    }
    %c10_i32_7 = arith.constant 10 : i32
    %c0_8 = arith.constant 0 : index
    %c0_9 = arith.constant 0 : index
    %8 = vector.load %arg7[%c0_8, %c0_9] : memref<8x256xf32, #tpu.memory_space<vmem>>, vector<8x256xf32>
    tpu.vector_store %arg7[%c0_8, %c0_9], %7 {strides = array<i32>} : memref<8x256xf32, #tpu.memory_space<vmem>>, vector<8x256xf32>,
    return
  }
  func.func @transform_0(%arg0: i32, %arg1: memref<50xf32, #tpu.memory_space<smem>>) -> (i32, i32) {
    %c0_i32 = arith.constant 0 : i32
    %c0_i32_0 = arith.constant 0 : i32
    return %c0_i32, %arg0 : i32, i32
  }
  func.func @transform_1(%arg0: i32, %arg1: memref<50xf32, #tpu.memory_space<smem>>) -> (i32, i32) {
    %c0_i32 = arith.constant 0 : i32
    %c0_i32_0 = arith.constant 0 : i32
    return %c0_i32, %arg0 : i32, i32
  }
  func.func @transform_2(%arg0: i32, %arg1: memref<50xf32, #tpu.memory_space<smem>>) -> (i32, i32, i32) {
    %c0_i32 = arith.constant 0 : i32
    %c0_i32_0 = arith.constant 0 : i32
    %c0_i32_1 = arith.constant 0 : i32
    return %c0_i32, %c0_i32_0, %arg0 : i32, i32, i32
  }
  func.func @transform_3(%arg0: i32, %arg1: memref<50xf32, #tpu.memory_space<smem>>) -> (i32, i32) {
    %c0_i32 = arith.constant 0 : i32
    %c0_i32_0 = arith.constant 0 : i32
    %c0_i32_1 = arith.constant 0 : i32
    return %c0_i32, %c0_i32_0 : i32, i32
  }
  func.func @transform_4(%arg0: i32, %arg1: memref<50xf32, #tpu.memory_space<smem>>) -> (i32, i32) {
    %c0_i32 = arith.constant 0 : i32
    %c0_i32_0 = arith.constant 0 : i32
    %c0_i32_1 = arith.constant 0 : i32
    return %c0_i32, %c0_i32_0 : i32, i32
  }
  func.func @transform_5(%arg0: i32, %arg1: memref<50xf32, #tpu.memory_space<smem>>) -> (i32, i32) {
    %c0_i32 = arith.constant 0 : i32
    %c0_i32_0 = arith.constant 0 : i32
    return %c0_i32, %arg0 : i32, i32
  }
}

</mosaic_0001>

<bundles_post_ra>
// kernel: tpu_custom_call.1
= control target key start
LH: loop header
LB: loop body
LE: loop exit
PB: predicated region body
PF: predicated region fallthrough
CT: control target
= control target key end

     0   :  { %s1145_s24 = smov [#allocation3]   ;;  %s1445_s0 = inlined_call_operand.vmem [shape: f32[50], index: 0, kind: input, shape index: {}]   ;;  %s1446_s1 = inlined_call_operand.hbm [shape: f32[8,512], index: 1, kind: input, shape index: {}]   ;;  %s1447_s2 = inlined_call_operand.hbm [shape: f32[8,512], index: 2, kind: input, shape index: {}]   ;;  %s1448_s3 = inlined_call_operand.hbm [shape: f32[10,8,512], index: 3, kind: input, shape index: {}]   ;;  %s1449_s4 = inlined_call_operand.vmem [shape: f32[8,8], index: 4, kind: input, shape index: {}]   ;;  %s1450_s5 = inlined_call_operand.vmem [shape: f32[8,1], index: 5, kind: input, shape index: {}]   ;;  %s1451_s6 = inlined_call_operand.hbm [shape: f32[8,512], index: 6, kind: output, shape index: {}]  }
   0x1   :  { %1456 = sst [smem:[#allocation18_spill]] %s1447_s2  ;;  %s12_s23 = sshll.u32 %s1445_s0, 4  ;;  %s13_s23 = int_to_ptr.vmem [resolvable:$true] %s12_s23 }
   0x2   :  { %15 = dma.vmem_to_smem %s13_s23, 16, %s1145_s24, [#allocation2] }
   0x3   :  { %1103 = dma.done.wait [#allocation2], 16 }
   0x4   :  { %1104 = vsyncadd [#allocation2], 4294967280 }
   0x5   :  { %18 = sfence }
   0x6   :  { %19 = vsyncpa [#allocation5], 0 }
   0x7   :  { %21 = vsyncpa [#allocation5 + $0x1], 0 }
   0x8   :  { %22 = vsyncpa [#allocation8], 0 }
   0x9   :  { %24 = vsyncpa [#allocation8 + $0x1], 0 }
   0xa   :  { %25 = vsyncpa [#allocation6], 0 }
   0xb   :  { %27 = vsyncpa [#allocation6 + $0x1], 0  ;;  %s1188_s25 = smov 0   ;;  %s1190_s26 = smov 0  }
   0xc   :  { %s1192_s27 = smov 0   ;;  %s1194_s28 = smov 0  }
   0xd LB: > { %1457 = sst [smem:[#allocation15_spill]] %s1127_s27  ;;  %s1209_s0 = sadd.s32 4294967295, %s1131_s28   ;;  %s1131_s28 = sphi %s1194_s28, %s1477_s28   ;;  %s1127_s27 = sphi %s1192_s27, %s1474_s27   ;;  %s1123_s26 = sphi %s1190_s26, %s1476_s26   ;;  %s1119_s25 = sphi %s1188_s25, %s1475_s25  }
   0xe   : > { %s830_s29 = sadd.s32 4294967294, %s1131_s28   ;;  %s1213_s30 = sadd.s32 1, %s1131_s28  }
   0xf   : > { %s40_s7 = sadd.s32 1, %s1127_s27  ;;  %s37_s8 = ssub.s32 %s1131_s28, %s1213_s30 }
  0x10   : > { %p47_p0 = scmp.ne.s32.totalorder %s1127_s27, %s1123_s26  ;;  %p38_p1 = scmp.eq.s32.totalorder %s37_s8, 0 }
  0x11   : > { %p48_p2 = scmp.eq.s32.totalorder %s1131_s28, 0  ;;  %p53_p3 = scmp.ne.s32.totalorder %s1123_s26, %s1119_s25 }
  0x12   : > { %p54_p4 = scmp.eq.s32.totalorder %s1209_s0, 0  ;;  %p171_p7 = scmp.eq.s32.totalorder %s1209_s0, 1 }
  0x13   : > { %s1225_s9 = scalar_select %p38_p1, %s1127_s27, %s40_s7  }
  0x14   : > { %p49_p5 = por %p48_p2, %p47_p0  ;;  %p1227_p6 = por %p54_p4, %p53_p3 }
  0x15   : > { %1458 = sst [smem:[#allocation16_spill]] %s1225_s9  ;;  %p177_p8 = scmp.eq.s32.totalorder %s830_s29, 1 }
  0x16   : > { %p881_p10 = scmp.lt.s32.totalorder %s1131_s28, 2  ;;  %p1234_p11 = por %p171_p7, %p47_p0 }
  0x17   : > { %p1238_p12 = por %p177_p8, %p53_p3  ;;  %s1243_s13 = sand.u32 1, %s1127_s27  }
  0x18   : > { %s1246_s14 = sshll.u32 %s1131_s28, 4  ;;  %s1452_s15 = sshll.u32 %s1243_s13, 4 }
  0x19   : > { %p1249_p13 = pnand %p881_p10, %p49_p5  ;;  %s223_s17 = sand.u32 1, %s1131_s28  }
  0x1a   : > { %s1463_s2 = sld [smem:[#allocation18_spill]]  ;;  %s227_s21 = scalar_lea.vmem [#allocation7], %s1452_s15 }
  0x1b   : > { %s236_s22 = sshll.u32 %s227_s21, 4  ;;  %s857_s24 = smul.u32 160, %s1243_s13  ;;  %s237_s22 = int_to_ptr.vmem [resolvable:$true] %s236_s22 }
  0x1c   : > { %s1261_s29 = scalar_lea.sflag [#allocation8], %s223_s17  ;;  %p961_p1 = pneg %p1249_p13 }
  0x20   : > { %s232_s20 = scalar_lea.hbm %s1463_s2, %s1246_s14  ;;  %s964_s21 = scalar_lea.hbm %s1463_s2, 32 }
  0x21   : > { %s234_s23 = sshll.u32 %s232_s20, 4  ;;  %s235_s23 = int_to_ptr.hbm [resolvable:$true] %s234_s23 }
  0x22   : > { %s957_s7 = sshra.s32 %s235_s23, 4  ;;  %s958_s7 = int_to_ptr.hbm [resolvable:$true] %s957_s7 }
  0x23   : > { %s959_s8 = scalar_lea.hbm %s958_s7, 16  ;;  %p965_p4 = scmp.lt.s32.totalorder %s958_s7, %s1463_s2 }
  0x24   : > { %p960_p0 = scmp.ne.s32.totalorder %s958_s7, %s959_s8  ;;  %p966_p5 = scmp.lt.s32.totalorder %s964_s21, %s959_s8 }
  0x26   : > { %p962_p2 = pnand %p961_p1, %p960_p0  ;;  %p967_p7 = por %p966_p5, %p965_p4 }
  0x28   : > { %p963_p3 = pneg %p962_p2 }
  0x2a   : > { %p968_p8 = pnand %p967_p7, %p963_p3 }
  0x2c   : > { %971 = shalt.err (!%p968_p8)
}
  0x2d   : > { %873 = dma.hbm_to_vmem [thread:$0]  (!%p1249_p13), %s235_s23, 256, %s237_s22, %s1261_s29  }
  0x2e   : > { %s252_s19 = scalar_lea.hbm %s1448_s3, %s1246_s14  ;;  %s247_s7 = scalar_lea.vmem [#allocation9], %s857_s24 }
  0x2f   : > { %s1281_s15 = sshll.u32 %s252_s19, 4  ;;  %s255_s8 = sshll.u32 %s247_s7, 4  ;;  %s1284_s8 = int_to_ptr.vmem [resolvable:$true] %s255_s8 }
  0x30   : > { %1464 = sst [smem:[#allocation17_spill]] %s1281_s15  ;;  %p841_p10 = scmp.ge.s32.totalorder %s1131_s28, 1 }
  0x31   : > { %p263_p0 = scmp.lt.s32.totalorder %s1131_s28, 3  ;;  %s212_s20 = scalar_lea.hbm %s1446_s1, %s1246_s14 }
  0x32   : > { %s214_s17 = sshll.u32 %s212_s20, 4  ;;  %s1466_s18 = sshll.u32 %s1243_s13, 4  ;;  %s215_s17 = int_to_ptr.hbm [resolvable:$true] %s214_s17 }
  0x33   : > { %p1288_p2 = pnand %p841_p10, %p263_p0  ;;  %s207_s19 = scalar_lea.vmem [#allocation4], %s1466_s18 }
  0x34   : > { %s216_s2 = sshll.u32 %s207_s19, 4  ;;  %s204_s24 = scalar_lea.sflag [#allocation5], %s1243_s13  ;;  %s217_s2 = int_to_ptr.vmem [resolvable:$true] %s216_s2 }
  0x35   : > { %s987_s7 = sshra.s32 %s215_s17, 4  ;;  %s994_s22 = scalar_lea.hbm %s1446_s1, 32  ;;  %s988_s7 = int_to_ptr.hbm [resolvable:$true] %s987_s7 }
  0x36   : > { %s989_s15 = scalar_lea.hbm %s988_s7, 16  ;;  %p995_p7 = scmp.lt.s32.totalorder %s988_s7, %s1446_s1 }
  0x37   : > { %p990_p3 = scmp.ne.s32.totalorder %s988_s7, %s989_s15  ;;  %p996_p8 = scmp.lt.s32.totalorder %s994_s22, %s989_s15 }
  0x39   : > { %p992_p4 = pnand %p990_p3, %p961_p1  ;;  %p997_p10 = por %p996_p8, %p995_p7 }
  0x3b   : > { %p993_p5 = pneg %p992_p4 }
  0x3d   : > { %p998_p0 = pnand %p997_p10, %p993_p5 }
  0x3f   : > { %1001 = shalt.err (!%p998_p0)
}
  0x40   : > { %s1467_s13 = sld [smem:[#allocation17_spill]]  ;;  %s1024_s15 = scalar_lea.hbm %s1448_s3, 320 }
  0x41   : > { %870 = dma.hbm_to_vmem [thread:$0]  (!%p1249_p13), %s215_s17, 256, %s217_s2, %s204_s24  }
  0x46   : > { %s1468_s20 = int_to_ptr.hbm [resolvable:$true] %s1467_s13 }
  0x47   : > { %s1017_s18 = sshra.s32 %s1468_s20, 4  ;;  %s1018_s18 = int_to_ptr.hbm [resolvable:$true] %s1017_s18 }
  0x48   : > { %s1019_s19 = scalar_lea.hbm %s1018_s18, 160  ;;  %p1025_p5 = scmp.lt.s32.totalorder %s1018_s18, %s1448_s3 }
  0x49   : > { %p1020_p3 = scmp.ne.s32.totalorder %s1018_s18, %s1019_s19  ;;  %p1026_p7 = scmp.lt.s32.totalorder %s1024_s15, %s1019_s19 }
  0x4b   : > { %p1022_p4 = pnand %p1020_p3, %p961_p1  ;;  %p1027_p8 = por %p1026_p7, %p1025_p5 }
  0x4d   : > { %p1023_p9 = pneg %p1022_p4 }
  0x4f   : > { %p1028_p10 = pnand %p1027_p8, %p1023_p9 }
  0x51   : > { %1031 = shalt.err (!%p1028_p10)
}
  0x52   : > { %s1146_s2 = smov 512   ;;  %s1147_s17 = smov 256  }
  0x53   : > { %s1148_s24 = smov 16   ;;  %s1469_s14 = smov %s1468_s20 }
  0x54   : > { %876 = dma.hbm_to_vmem [thread:$0]  (!%p1249_p13), %s1469_s14, 2560, %s1284_s8, %s1261_s29, %s1146_s2, %s1147_s17, %s1148_s24  }
  0x55   : > { %267 = sbr.rel (%p1288_p2) target bundleno = 386 (0x182), region = 40  ;;  %s1330_s23 = sand.u32 (!%p1288_p2), 1, %s1123_s26  }
  0x56   : > { %s842_s20 = sshll.u32 (!%p1288_p2), %s1330_s23, 4  ;;  %s270_s18 = scalar_lea.sflag (!%p1288_p2), [#allocation5], %s1330_s23 }
  0x57   : > { %s273_s19 = scalar_lea.vmem (!%p1288_p2), [#allocation4], %s842_s20 }
  0x5a   : > { %1106 = dma.done.wait (%p1227_p6), %s270_s18, 256  }
  0x5b   : > { %1108 = vsyncadd (%p1227_p6), %s270_s18, 4294967040  ;;  %s279_s16 = sand.u32 1, %s1209_s0   ;;  %s283_s8 = scalar_lea.vmem [#allocation7], %s842_s20 }
  0x5c   : > { %s280_s29 = scalar_lea.sflag [#allocation8], %s279_s16 }
  0x5d   : > { %1110 = dma.done.wait (%p1227_p6), %s280_s29, 2816  }
  0x5e   : > { %1112 = vsyncadd (%p1227_p6), %s280_s29, 4294964480  ;;  %s858_s21 = smul.u32 160, %s1330_s23  ;;  %v1149_v0 = vmov 0   ;;  %v1344_v1 = vld [vmem:[%s283_s8] sm:$0xff]  ;;  %v1346_v2 = vld [vmem:[%s283_s8 + $0x8] sm:$0xff]  ;;  %s1360_s7 = scalar_lea.vmem [#allocation10], %s842_s20 }
  0x5f   : > { %944 = vset.pattern.permute.xlu0 %v1149_v0  ;;  %v1351_v3 = vld [vmem:[%s1449_s4] sm:$0xff]  ;;  %v345_v5 = vld [vmem:[%s273_s19 + $0x8] sm:$0xff]   ;;  %s1366_s22 = smov 0  }
  0x60   : > { %v344_v4 = vld [vmem:[%s273_s19] sm:$0xff]   ;;  %s1358_s10 = scalar_lea.vmem [#allocation9], %s858_s21 }
  0x61   : > { %v338_v6 = vld [vmem:[%s1450_s5] sm:$0xff] }
  0x62   : > { %341 = vperm.xlu0 %944, %v338_v6  }
  0xd4   : > { %v1356_v7 = vpop.permute.xlu0 %341 }
  0xd5 LB: >> { %vm366_vm0 = vcmask 64512   ;;  %v385_v9 = vand.u32 4294901760, %v1139_v4  ;;  %v531_v11 = vand.u32 4294901760, %v1135_v5  ;;  %s354_s2 = smul.u32 5, %s1143_s22  ;;  %s855_s21 = sshll.u32 %s1143_s22, 4  ;;  %s1143_s22 = sphi %s1366_s22, %s351_s22   ;;  %v1139_v4 = vphi %v344_v4, %v1471_v4   ;;  %v1135_v5 = vphi %v345_v5, %v1470_v5  }
  0xd6   : >> { %v368_v8 = vsel %vm366_vm0, %v1351_v3, 0  ;;  %s677_s13 = scalar_lea.vmem %s1358_s10, %s855_s21 [#allocation9]  ;;  %s351_s22 = sadd.s32 1, %s1143_s22  }
  0xd7   : >> { %v387_v10 = vand.u32 4294901760, %v368_v8  ;;  %v412_v12 = vsub.f32 %v1139_v4, %v385_v9  ;;  %386 = vmatpush.msra.mxu0 %v385_v9  ;;  %462 = vmatpush.msra.mxu3 %v385_v9  ;;  %v558_v14 = vsub.f32 %v1135_v5, %v531_v11  ;;  %s355_s17 = sld [smem:[#allocation3 + %s354_s2]]  ;;  %s356_s24 = sadd.s32 1, %s354_s2  ;;  %v678_v45 = vld [vmem:[%s677_s13] sm:$0xff]  ;;  %v679_v63 = vld [vmem:[%s677_s13 + $0x8] sm:$0xff] }
  0xd8   : >> { %s358_s14 = sadd.s32 2, %s354_s2  ;;  %s360_s20 = sadd.s32 3, %s354_s2 }
  0xd9   : >> { %v388_v13 = vsub.f32 %v368_v8, %v387_v10  ;;  %439 = vmatpush.msra.mxu2 %v412_v12  ;;  %v413_v16 = vand.u32 4294901760, %v412_v12  ;;  %v559_v17 = vand.u32 4294901760, %v558_v14  ;;  %s1384_s18 = sld [smem:[#allocation3 + %s356_s24]]  ;;  %s362_s16 = sadd.s32 4, %s354_s2 }
  0xda   : >> { %s1386_s19 = sld [smem:[#allocation3 + %s358_s14]]  ;;  %p348_p6 = scmp.ge.s32.totalorder %s351_s22, 10  }
  0xdb   : >> { %v389_v15 = vand.u32 4294901760, %v388_v13  ;;  %442 = vmatmul.f32.vlgmr.msra.gmra.mxu2 %v388_v13  ;;  %v560_v19 = vsub.f32 %v558_v14, %v559_v17  ;;  %v414_v20 = vsub.f32 %v412_v12, %v413_v16  ;;  %488 = vmatpush.msrb.mxu0 %v413_v16  ;;  %s1388_s29 = sld [smem:[#allocation3 + %s360_s20]]  ;;  %s856_s27 = sshll.u32 (%p348_p6), %s1209_s0, 4 }
  0xdc   : >> { %532 = vmatpush.msrb.mxu2 %v531_v11  ;;  %s1390_s8 = sld [smem:[#allocation3 + %s362_s16]]  ;;  %s699_s2 = scalar_lea.hbm (%p348_p6), %s1451_s6, %s856_s27 }
  0xdd   : >> { %v390_v18 = vsub.f32 %v388_v13, %v389_v15  ;;  %466 = vmatmul.f32.vlgmr.msra.gmra.mxu3 %v389_v15  ;;  %v561_v22 = vand.u32 4294901760, %v560_v19  ;;  %v415_v23 = vand.u32 4294901760, %v414_v20  ;;  %v364_v24 = vstv %s355_s17  ;;  %s701_s17 = sshll.u32 (%p348_p6), %s1360_s7, 4  ;;  %s703_s24 = sshll.u32 (%p348_p6), %s699_s2, 4  ;;  %s702_s17 = int_to_ptr.vmem [resolvable:$true] %s701_s17  ;;  %s704_s24 = int_to_ptr.hbm [resolvable:$true] %s703_s24 }
  0xde   : >> { %634 = vmatpush.msra.mxu2 %v559_v17  ;;  %v365_v25 = vmul.f32 %v364_v24, %v1356_v7  ;;  %s688_s14 = scalar_lea.sflag (%p348_p6), [#allocation6], %s1330_s23  ;;  %s1061_s22 = sshra.s32 (%p348_p6), %s704_s24, 4  ;;  %s1062_s22 = int_to_ptr.hbm [resolvable:$true] %s1061_s22 }
  0xdf   : >> { %v391_v21 = vand.u32 4294901760, %v390_v18  ;;  %562 = vmatpush.msrb.mxu3 %v561_v22  ;;  %416 = vmatpush.msra.mxu1 %v415_v23  ;;  %v662_v35 = vstv %s1384_s18  ;;  %s1063_s10 = scalar_lea.hbm (%p348_p6), %s1062_s22, 16  ;;  %s1067_s0 = scalar_lea.hbm (%p348_p6), %s1451_s6, 32 }
  0xe0   : >> { %418 = vmatmul.f32.vlgmr.msra.gmra.mxu1 %v387_v10  ;;  %v665_v39 = vstv %s1386_s19  ;;  %v663_v44 = vmul.f32 %v1139_v4, %v662_v35  ;;  %v664_v62 = vmul.f32 %v1135_v5, %v662_v35  ;;  %p1064_p9 = scmp.ne.s32.totalorder (%p348_p6), %s1062_s22, %s1063_s10  ;;  %p1068_p2 = scmp.lt.s32.totalorder (%p348_p6), %s1062_s22, %s1451_s6 }
  0xe1   : >> { %392 = vmatmul.f32.vlgmr.msra.gmra.mxu0 %v391_v21  ;;  %656 = vmatpush.msra.mxu3 %v531_v11  ;;  %v670_v40 = vstv %s1388_s29  ;;  %p1069_p0 = scmp.lt.s32.totalorder (%p348_p6), %s1067_s0, %s1063_s10 }
  0xe2   : >> { %585 = vmatpush.msra.mxu0 %v558_v14  ;;  %510 = vmatpush.msrb.mxu1 %v385_v9  ;;  %v680_v46 = vstv %s1390_s8  ;;  %v671_v48 = vmul.f32 %v670_v40, %v1344_v1  ;;  %v672_v4 = vmul.f32 %v670_v40, %v1346_v2  ;;  %p1065_p13 = pnand (%p348_p6), %p1064_p9, %p1234_p11 }
  0xe3   : >> { %538 = vmatmul.f32.vlgmr.msrb.gmra.mxu2 %v391_v21  ;;  %v681_v51 = vmul.f32 %v680_v46, %v678_v45  ;;  %v682_v8 = vmul.f32 %v680_v46, %v679_v63  ;;  %p1070_p3 = por (%p348_p6), %p1069_p0, %p1068_p2 }
  0xe4   : >> { %608 = vmatpush.msra.mxu1 %v531_v11  ;;  %p1066_p1 = pneg (%p348_p6), %p1065_p13 }
  0xe5   : >> { %564 = vmatmul.f32.vlgmr.msrb.gmra.mxu3 %v387_v10 }
  0xe6   : > { %p1071_p4 = pnand (%p348_p6), %p1070_p3, %p1066_p1 }
  0xe8   : >> { %512 = vmatmul.f32.vlgmr.msrb.gmra.mxu1 %v387_v10 }
  0xe9   : >> { %490 = vmatmul.f32.vlgmr.msrb.gmra.mxu0 %v387_v10 }
  0xeb   : >> { %636 = vmatmul.f32.vlgmr.msra.gmra.mxu2 %v387_v10 }
  0xed   : >> { %658 = vmatmul.f32.vlgmr.msra.gmra.mxu3 %v387_v10 }
  0xf0   : >> { %612 = vmatmul.f32.vlgmr.msra.gmra.mxu1 %v389_v15 }
  0xf1   : >> { %588 = vmatmul.f32.vlgmr.msra.gmra.mxu0 %v388_v13 }
 0x15d   : >> { %v419_v29 = vpop.f32.mrf.mxu1 }
 0x15e   : >> { %v393_v26 = vpop.f32.mrf.mxu0  ;;  %v443_v28 = vpop.f32.mrf.mxu2 }
 0x15f   : >> { %v394_v27 = vadd.f32 %v393_v26, %v365_v25 }
 0x160   : >> { %v467_v30 = vpop.f32.mrf.mxu3 }
 0x161   : >> { %v420_v31 = vadd.f32 %v419_v29, %v394_v27 }
 0x163   : >> { %v444_v32 = vadd.f32 %v443_v28, %v420_v31 }
 0x165   : >> { %v468_v33 = vadd.f32 %v467_v30, %v444_v32  ;;  %v513_v38 = vpop.f32.mrf.mxu1 }
 0x166   : >> { %v491_v34 = vpop.f32.mrf.mxu0  ;;  %v539_v37 = vpop.f32.mrf.mxu2 }
 0x167   : >> { %v492_v36 = vadd.f32 %v491_v34, %v468_v33  ;;  %v540_v41 = vadd.f32 %v539_v37, %v365_v25 }
 0x168   : >> { %v565_v42 = vpop.f32.mrf.mxu3 }
 0x169   : >> { %v514_v43 = vadd.f32 %v513_v38, %v492_v36  ;;  %v566_v49 = vadd.f32 %v565_v42, %v540_v41 }
 0x16b   : >> { %v666_v47 = vmul.f32 %v665_v39, %v514_v43 }
 0x16d   : >> { %v668_v50 = vadd.f32 %v666_v47, %v663_v44  ;;  %v613_v55 = vpop.f32.mrf.mxu1 }
 0x16e   : >> { %v589_v52 = vpop.f32.mrf.mxu0  ;;  %v637_v56 = vpop.f32.mrf.mxu2 }
 0x16f   : >> { %v673_v53 = vadd.f32 %v671_v48, %v668_v50  ;;  %v590_v54 = vadd.f32 %v589_v52, %v566_v49 }
 0x170   : >> { %v659_v59 = vpop.f32.mrf.mxu3 }
 0x171   : >> { %v683_v57 = vadd.f32 %v681_v51, %v673_v53   ;;  %v614_v58 = vadd.f32 %v613_v55, %v590_v54 }
 0x173   : >> { %v638_v60 = vadd.f32 %v637_v56, %v614_v58  ;;  %685 = vst [vmem:[%s1360_s7] sm:$0xff] (%p348_p6), %v683_v57 }
 0x175   : >> { %v660_v61 = vadd.f32 %v659_v59, %v638_v60 }
 0x177   : >> { %v667_v0 = vmul.f32 %v665_v39, %v660_v61 }
 0x179   : >> { %v669_v6 = vadd.f32 %v667_v0, %v664_v62 }
 0x17b   : >> { %v674_v9 = vadd.f32 %v672_v4, %v669_v6  ;;  %v1471_v4 = vmov %v683_v57  ;;  %350 = sbr.rel (!%p348_p6) target bundleno = 213 (0xd5), region = 117 }
 0x17d   : >> { %v684_v10 = vadd.f32 %v682_v8, %v674_v9  }
 0x17f   : >> { %v1470_v5 = vmov %v684_v10  ;;  %686 = vst [vmem:[%s1360_s7 + $0x8] sm:$0xff] (%p348_p6), %v684_v10 }
 0x180   : > { %1074 = shalt.err (!%p1071_p4)
}
 0x181   : > { %865 = dma.vmem_to_hbm [thread:$0]  (%p1234_p11), %s702_s17, 256, %s704_s24, %s688_s14  }
 0x182 PF: > { %s715_s23 = sand.u32 1, %s1119_s25   ;;  %p1472_p5 = scmp.ge.s32.totalorder %s1131_s28, 2 }
 0x183   : > { %s716_s7 = scalar_lea.sflag [#allocation6], %s715_s23 }
 0x184   : > { %p878_p7 = pnand %p1472_p5, %p1238_p12 }
 0x186   : > { %p879_p8 = pneg %p878_p7 }
 0x188   : > { %1114 = dma.done.wait (%p879_p8), %s716_s7, 256  }
 0x189   : > { %1116 = vsyncadd (%p879_p8), %s716_s7, 4294967040  ;;  %s1473_s29 = sld [smem:[#allocation15_spill]]  ;;  %p30_p10 = scmp.ge.s32.totalorder %s1213_s30, 4  }
 0x18a   : > { %s1474_s27 = sld [smem:[#allocation16_spill]]  ;;  %s1475_s25 = smov %s1123_s26 }
 0x18b   : > { %s1477_s28 = smov %s1213_s30  ;;  %32 = sbr.rel (!%p30_p10) target bundleno = 13 (0xd), region = 128 }
 0x18f   : > { %s1476_s26 = smov %s1473_s29 }
 0x190   :  { %722 = vsyncpa [#allocation5], 1 }
 0x191   :  { %724 = vsyncpa [#allocation5 + $0x1], 1 }
 0x192   :  { %725 = vsyncpa [#allocation8], 1 }
 0x193   :  { %727 = vsyncpa [#allocation8 + $0x1], 1 }
 0x194   :  { %728 = vsyncpa [#allocation6], 1 }
 0x195   :  { %730 = vsyncpa [#allocation6 + $0x1], 1 }

</bundles_post_ra>
